<compile_context>
chip_gen: v7x
topology: tpu7x:2x2x1
jax: 0.10.0
libtpu: 0.0.40
codegen_flags: <defaults>
</compile_context>

<pallas_src>
import math
import itertools

import jax
import jax.numpy as jnp
from jax.experimental import pallas as pl
from jax.experimental.pallas import tpu as pltpu


TARGET_GRID_STEPS = 4   # >= 2 per TensorCore on v7x; >= 2-3 wanted on v5e/v6e.


def _get_pad(size: int, multiple: int):
    new_size = math.ceil(size / multiple) * multiple
    pad_size = new_size - size
    pad_left = pad_size // 2
    pad_right = pad_size - pad_left
    return pad_left, pad_right


def _swapped_pads(H: int, W: int, multiple: int):
    # PyTorch builds pads by iterating (H, W) but F.pad applies the first pair
    # to the LAST dim (W) and the second pair to H.  Reproduce exactly.
    pads = list(itertools.chain.from_iterable(
        _get_pad(m, multiple) for m in (H, W)))
    w_l, w_r, h_l, h_r = pads
    return h_l, h_r, w_l, w_r


def _physical_vmem_bytes() -> int:
    cap = None
    try:
        info = pltpu.get_tpu_info()
        for name in ("vmem_capacity_bytes", "vmem_size_bytes", "vmem_bytes"):
            cap = getattr(info, name, None)
            if cap:
                break
    except Exception:
        cap = None
    if not cap:
        cap = 64 * 1024 * 1024   # safe on every generation (v7x has 64 MiB/TC)
    return int(cap)


def _round_up(v: int, m: int) -> int:
    return -(-v // m) * m


def _min_sublanes(itemsize: int) -> int:
    # Min-tile sublane count: (8,128) for 4B, (16,128) for 2B, (32,128) for 1B.
    return max(8, 32 // itemsize)


def _tile_bytes(h: int, w: int, itemsize: int) -> int:
    # VMEM footprint of one (h, w) slice after dtype-aware (sub, 128) tiling.
    return _round_up(h, _min_sublanes(itemsize)) * _round_up(w, 128) * itemsize


def _vmem_limit(physical: int, tiles_bytes: int) -> int:
    want = max(32 * 1024 * 1024, tiles_bytes + 16 * 1024 * 1024)
    return int(min(physical * 4 // 5, want))


# ---------------------------------------------------------------------------
# Kernel bodies
# ---------------------------------------------------------------------------

def _flat_pad_kernel(TB, L, pad_l, pad_r, dtype):
    """W-pad == 0 path: blocks (TB, L) -> (TB, L_out), lane dense."""
    def kernel(x_ref, o_ref):
        # One lane-dense store of the whole input slab at lane offset pad_l,
        # plus at most two dense zero fills for the flattened H padding.
        o_ref[:, pad_l:pad_l + L] = x_ref[...]
        if pad_l > 0:
            o_ref[:, :pad_l] = jnp.zeros((TB, pad_l), dtype)
        if pad_r > 0:
            o_ref[:, pad_l + L:] = jnp.zeros((TB, pad_r), dtype)
    return kernel


def _hw_pad_kernel(TB, H, W, h_l, h_r, w_l, w_r, W_out, dtype):
    """General path: blocks (TB, H, W) -> (TB, H_out, W_out)."""
    def kernel(x_ref, o_ref):
        # Build the full-width interior slab in registers (merges the interior
        # with the two narrow W-side strips) so every interior output vreg is
        # written by exactly one store.
        pieces = []
        if w_l > 0:
            pieces.append(jnp.zeros((TB, H, w_l), dtype))
        pieces.append(x_ref[...])
        if w_r > 0:
            pieces.append(jnp.zeros((TB, H, w_r), dtype))
        slab = pieces[0] if len(pieces) == 1 else jnp.concatenate(pieces, axis=-1)
        o_ref[:, h_l:h_l + H, :] = slab
        # Full-width top / bottom zero strips (statically skipped when 0).
        if h_l > 0:
            o_ref[:, :h_l, :] = jnp.zeros((TB, h_l, W_out), dtype)
        if h_r > 0:
            o_ref[:, h_l + H:, :] = jnp.zeros((TB, h_r, W_out), dtype)
    return kernel


# ---------------------------------------------------------------------------
# Wrapper
# ---------------------------------------------------------------------------

def center_padding(x: jax.Array, multiple: int = 14) -> jax.Array:
    *lead, H, W = x.shape
    h_l, h_r, w_l, w_r = _swapped_pads(H, W, multiple)
    H_out = H + h_l + h_r
    W_out = W + w_l + w_r

    B = math.prod(lead) if lead else 1
    dt = x.dtype
    itemsize = jnp.dtype(dt).itemsize

    physical = _physical_vmem_bytes()
    tile_budget = physical // 2      # double-buffered in + out tiles live here

    cost = pl.CostEstimate(
        flops=0, transcendentals=0,
        bytes_accessed=(B * H * W + B * H_out * W_out) * itemsize)

    # ---- Fast path: no W padding -> flatten last two dims (lane dense). ----
    if w_l == 0 and w_r == 0:
        L, L_out = H * W, H_out * W
        per_img = 2 * (_round_up(L, 128) + _round_up(L_out, 128)) * itemsize
        sub = _min_sublanes(itemsize)
        tb_cap = tile_budget // max(per_img, 1)
        TB = None
        if B <= sub:
            if tb_cap >= B:
                TB = B                               # block == full batch dim
        elif tb_cap >= sub:
            TB = max(1, min(tb_cap, pl.cdiv(B, TARGET_GRID_STEPS)))
            TB = max(sub, (TB // sub) * sub)         # sublane-aligned 2-D block
        if TB is not None:
            grid = (pl.cdiv(B, TB),)
            out = pl.pallas_call(
                _flat_pad_kernel(TB, L, h_l * W, h_r * W, dt),
                out_shape=jax.ShapeDtypeStruct((B, L_out), dt),
                grid=grid,
                in_specs=[pl.BlockSpec((TB, L), lambda i: (i, 0))],
                out_specs=pl.BlockSpec((TB, L_out), lambda i: (i, 0)),
                compiler_params=pltpu.CompilerParams(
                    dimension_semantics=("parallel",),
                    vmem_limit_bytes=_vmem_limit(physical, TB * per_img)),
                cost_estimate=cost,
            )(x.reshape(B, L))
            return out.reshape(*lead, H_out, W_out)

    # ---- General path: (TB, H, W) -> (TB, H_out, W_out) blocks. ----
    per_img = 2 * (_tile_bytes(H, W, itemsize) + _tile_bytes(H_out, W_out, itemsize))
    tb_cap = max(1, tile_budget // max(per_img, 1))
    TB = max(1, min(tb_cap, pl.cdiv(B, TARGET_GRID_STEPS)))
    grid = (pl.cdiv(B, TB),)
    out = pl.pallas_call(
        _hw_pad_kernel(TB, H, W, h_l, h_r, w_l, w_r, W_out, dt),
        out_shape=jax.ShapeDtypeStruct((B, H_out, W_out), dt),
        grid=grid,
        in_specs=[pl.BlockSpec((TB, H, W), lambda i: (i, 0, 0))],
        out_specs=pl.BlockSpec((TB, H_out, W_out), lambda i: (i, 0, 0)),
        compiler_params=pltpu.CompilerParams(
            dimension_semantics=("parallel",),
            vmem_limit_bytes=_vmem_limit(physical, TB * per_img)),
        cost_estimate=cost,
    )(x.reshape(B, H, W))
    return out.reshape(*lead, H_out, W_out)


def _reference(x: jax.Array, multiple: int) -> jax.Array:
    H, W = x.shape[-2], x.shape[-1]
    h_l, h_r, w_l, w_r = _swapped_pads(H, W, multiple)
    cfg = [(0, 0)] * (x.ndim - 2) + [(h_l, h_r), (w_l, w_r)]
    return jnp.pad(x, cfg)


if __name__ == "__main__":
    key = jax.random.PRNGKey(0)
    multiple = 14

    cases = [
        ((2, 4, 16, 16), jnp.float32),   # symmetric pads on both dims
        ((2, 3, 28, 14), jnp.bfloat16),  # zero pads everywhere (pure copy)
        ((1, 3, 17, 9),  jnp.float32),   # asymmetric pads, odd sizes
        ((2, 4, 28, 16), jnp.float32),   # W-pad == 0 -> lane-dense flat path
        ((1, 5, 17, 9),  jnp.float32),   # B = 5 -> ragged last batch block
    ]

    keys = jax.random.split(key, len(cases))
    for k, (shape, dtype) in zip(keys, cases):
        x = jax.random.normal(k, shape, dtype=dtype)
        out = jax.block_until_ready(center_padding(x, multiple=multiple))
        ref = _reference(x, multiple)
        assert out.shape == ref.shape, (shape, out.shape, ref.shape)
        assert jnp.array_equal(out, ref), f"mismatch vs reference: {shape} {dtype}"

    print("KERNEL_OK")
</pallas_src>

<mosaic_0001>
module attributes {stable_mosaic.version = 11 : i64} {
  func.func @kernel(%arg0: i32, %arg1: memref<2x16x16xf32, #tpu.memory_space<vmem>>, %arg2: memref<2x28x28xf32, #tpu.memory_space<vmem>>) attributes {dimension_semantics = [#tpu.dimension_semantics<parallel>], iteration_bounds = array<i64: 4>, scalar_prefetch = 0 : i64, scratch_operands = 0 : i64, tpu.core_type = #tpu.core_type<tc>, window_params = [{transform_indices = @transform_0, window_bounds = array<i64: 2, 16, 16>}, {transform_indices = @transform_1, window_bounds = array<i64: 2, 28, 28>}]} {
    %cst = arith.constant 0.000000e+00 : f32
    %0 = vector.broadcast %cst : f32 to vector<2x16x6xf32>
    %c0 = arith.constant 0 : index
    %c0_0 = arith.constant 0 : index
    %c0_1 = arith.constant 0 : index
    %1 = vector.load %arg1[%c0, %c0_0, %c0_1] : memref<2x16x16xf32, #tpu.memory_space<vmem>>, vector<2x16x16xf32>
    %cst_2 = arith.constant 0.000000e+00 : f32
    %2 = vector.broadcast %cst_2 : f32 to vector<2x16x6xf32>
    %3 = tpu.concatenate %0, %1, %2 in 2 : vector<2x16x6xf32>, vector<2x16x16xf32>, vector<2x16x6xf32> -> vector<2x16x28xf32>
    %c0_3 = arith.constant 0 : index
    %c6 = arith.constant 6 : index
    %c0_4 = arith.constant 0 : index
    %4 = vector.load %arg2[%c0_3, %c6, %c0_4] : memref<2x28x28xf32, #tpu.memory_space<vmem>>, vector<2x16x28xf32>
    tpu.vector_store %arg2[%c0_3, %c6, %c0_4], %3 {strides = array<i32>} : memref<2x28x28xf32, #tpu.memory_space<vmem>>, vector<2x16x28xf32>,
    %cst_5 = arith.constant 0.000000e+00 : f32
    %5 = vector.broadcast %cst_5 : f32 to vector<2x6x28xf32>
    %c0_6 = arith.constant 0 : index
    %c0_7 = arith.constant 0 : index
    %c0_8 = arith.constant 0 : index
    %6 = vector.load %arg2[%c0_6, %c0_7, %c0_8] : memref<2x28x28xf32, #tpu.memory_space<vmem>>, vector<2x6x28xf32>
    tpu.vector_store %arg2[%c0_6, %c0_7, %c0_8], %5 {strides = array<i32>} : memref<2x28x28xf32, #tpu.memory_space<vmem>>, vector<2x6x28xf32>,
    %cst_9 = arith.constant 0.000000e+00 : f32
    %7 = vector.broadcast %cst_9 : f32 to vector<2x6x28xf32>
    %c0_10 = arith.constant 0 : index
    %c22 = arith.constant 22 : index
    %c0_11 = arith.constant 0 : index
    %8 = vector.load %arg2[%c0_10, %c22, %c0_11] : memref<2x28x28xf32, #tpu.memory_space<vmem>>, vector<2x6x28xf32>
    tpu.vector_store %arg2[%c0_10, %c22, %c0_11], %7 {strides = array<i32>} : memref<2x28x28xf32, #tpu.memory_space<vmem>>, vector<2x6x28xf32>,
    return
  }
  func.func @transform_0(%arg0: i32) -> (i32, i32, i32) {
    %c0_i32 = arith.constant 0 : i32
    %c0_i32_0 = arith.constant 0 : i32
    %c0_i32_1 = arith.constant 0 : i32
    return %arg0, %c0_i32, %c0_i32_0 : i32, i32, i32
  }
  func.func @transform_1(%arg0: i32) -> (i32, i32, i32) {
    %c0_i32 = arith.constant 0 : i32
    %c0_i32_0 = arith.constant 0 : i32
    %c0_i32_1 = arith.constant 0 : i32
    return %arg0, %c0_i32, %c0_i32_0 : i32, i32, i32
  }
}

</mosaic_0001>

<bundles_post_ra>
// kernel: tpu_custom_call.1
= control target key start
LH: loop header
LB: loop body
LE: loop exit
PB: predicated region body
PF: predicated region fallthrough
CT: control target
= control target key end

     0   :  { %6 = vsyncpa [#allocation3], 0  ;;  %s514_s0 = inlined_call_operand.hbm [shape: f32[8,16,16], index: 0, kind: input, shape index: {}]   ;;  %s515_s1 = inlined_call_operand.vmem [shape: f32[8,28,28], index: 1, kind: output, shape index: {}]  }
   0x1   :  { %8 = vsyncpa [#allocation3 + $0x1], 0  ;;  %s393_s6 = smov 0   ;;  %s395_s7 = smov 0  }
   0x2   :  { %s397_s8 = smov 0   ;;  %s399_s9 = smov 0  }
   0x3 LB: > { %s251_s10 = sadd.s32 4294967295, %s376_s9   ;;  %s413_s11 = sadd.s32 1, %s376_s9   ;;  %s376_s9 = sphi %s399_s9, %s522_s9   ;;  %s372_s8 = sphi %s397_s8, %s521_s8   ;;  %s368_s7 = sphi %s395_s7, %s520_s7   ;;  %s364_s6 = sphi %s393_s6, %s519_s6  }
   0x4   : > { %s18_s12 = ssub.s32 %s376_s9, %s413_s11  ;;  %s21_s13 = sadd.s32 1, %s372_s8 }
   0x5   : > { %p19_p0 = scmp.eq.s32.totalorder %s18_s12, 0  ;;  %p28_p1 = scmp.ne.s32.totalorder %s372_s8, %s368_s7 }
   0x6   : > { %p29_p2 = scmp.eq.s32.totalorder %s376_s9, 0  ;;  %p34_p3 = scmp.ne.s32.totalorder %s368_s7, %s364_s6 }
   0x7   : > { %s423_s14 = scalar_select %p19_p0, %s372_s8, %s21_s13  }
   0x8   : > { %p30_p4 = por %p29_p2, %p28_p1  ;;  %p35_p5 = scmp.eq.s32.totalorder %s251_s10, 0 }
   0x9   : > { %p275_p6 = scmp.lt.s32.totalorder %s376_s9, 4  ;;  %s84_s16 = sand.u32 1, %s372_s8  }
   0xa   : > { %p428_p7 = por %p35_p5, %p34_p3  ;;  %s255_s17 = sshll.u32 %s84_s16, 5 }
   0xb   : > { %s267_s18 = sshll.u32 %s376_s9, 9  ;;  %s88_s22 = scalar_lea.vmem [#allocation2], %s255_s17 }
   0xc   : > { %s437_s21 = scalar_lea.hbm %s514_s0, %s267_s18  ;;  %s96_s23 = sshll.u32 %s88_s22, 4  ;;  %s439_s23 = int_to_ptr.vmem [resolvable:$true] %s96_s23 }
   0xd   : > { %p441_p8 = pnand %p275_p6, %p30_p4  ;;  %s446_s25 = scalar_lea.sflag [#allocation3], %s84_s16 }
   0xe   : > { %s312_s26 = scalar_lea.hbm %s437_s21, 512  ;;  %s317_s29 = scalar_lea.hbm %s514_s0, 2048 }
   0xf   : > { %p313_p10 = scmp.ne.s32.totalorder %s437_s21, %s312_s26  ;;  %p314_p11 = pneg %p441_p8 }
  0x10   : > { %p318_p0 = scmp.lt.u32.totalorder %s437_s21, %s514_s0  ;;  %p319_p1 = scmp.lt.u32.totalorder %s317_s29, %s312_s26 }
  0x11   : > { %p315_p12 = pnand %p314_p11, %p313_p10  ;;  %p321_p3 = scmp.lt.u32.totalorder %s312_s26, %s437_s21 }
  0x12   : > { %p320_p2 = por %p319_p1, %p318_p0 }
  0x13   : > { %p316_p13 = pneg %p315_p12 }
  0x14   : > { %p322_p4 = por %p321_p3, %p320_p2 }
  0x16   : > { %p323_p5 = pnand %p322_p4, %p316_p13 }
  0x18   : > { %326 = shalt.err (!%p323_p5)
}
  0x19   : > { %s327_s3 = scalar_lea.vmem %s439_s23, 512  ;;  %s378_s4 = smov [#allocation2]  }
  0x1a   : > { %p328_p6 = scmp.ne.s32.totalorder %s439_s23, %s327_s3  ;;  %s332_s5 = sshll.u32 %s378_s4, 4  ;;  %s333_s5 = int_to_ptr.vmem [resolvable:$false] %s332_s5 }
  0x1b   : > { %s334_s6 = scalar_lea.vmem %s333_s5, 1024  ;;  %p335_p9 = scmp.lt.s32.totalorder %s439_s23, %s333_s5 }
  0x1c   : > { %p330_p10 = pnand %p328_p6, %p314_p11  ;;  %p336_p0 = scmp.lt.s32.totalorder %s334_s6, %s327_s3 }
  0x1e   : > { %p331_p12 = pneg %p330_p10  ;;  %p337_p1 = por %p336_p0, %p335_p9 }
  0x20   : > { %p338_p2 = pnand %p337_p1, %p331_p12 }
  0x22   : > { %341 = shalt.err (!%p338_p2)
}
  0x23   : > { %s379_s12 = smov 128   ;;  %s380_s13 = smov 8  }
  0x24   : > { %274 = dma.hbm_to_vmem [thread:$0]  (!%p441_p8), %s437_s21, 512, %s439_s23, %s446_s25, %s379_s12, %s379_s12, %s380_s13  }
  0x25   : > { %p104_p11 = scmp.lt.s32.totalorder %s376_s9, 5  ;;  %p518_p13 = scmp.ge.s32.totalorder %s376_s9, 1 }
  0x27   : > { %p105_p3 = pnand %p518_p13, %p104_p11 }
  0x28   : > { %s110_s16 = sand.u32 (!%p105_p3), 1, %s368_s7  }
  0x29   : > { %108 = sbr.rel (%p105_p3) target bundleno = 173 (0xad), region = 24  ;;  %s260_s17 = sshll.u32 (!%p105_p3), %s110_s16, 5 }
  0x2a   : > { %s111_s18 = scalar_lea.sflag (!%p105_p3), [#allocation3], %s110_s16  ;;  %s114_s19 = scalar_lea.vmem (!%p105_p3), [#allocation2], %s260_s17 }
  0x30   : > { %359 = dma.done.wait (%p428_p7), %s111_s18, 512  }
  0x31   : > { %361 = vsyncadd (%p428_p7), %s111_s18, 4294966784  ;;  %s261_s20 = sshll.u32 %s251_s10, 1  ;;  %vm177_vm0 = vcmask 226304   ;;  %v142_v0 = vld [vmem:[%s114_s19] sm:$0xff]  ;;  %v144_v1 = vld [vmem:[%s114_s19 + $0x10] sm:$0xff]  ;;  %v381_v2 = vmov 0.0  }
  0x32   : > { %p136_p9 = scmp.lt.s32.totalorder %s261_s20, 7  ;;  %s382_s9 = smov 6   ;;  %v143_v3 = vld [vmem:[%s114_s19 + $0x8] sm:$0xff]  ;;  %v145_v4 = vld [vmem:[%s114_s19 + $0x18] sm:$0xff]  ;;  %vm162_vm1 = vcmask 48128   ;;  %vm167_vm2 = vcmask 179200  }
  0x33   : > { %150 = vrot.lane.b32.xlu0 %v142_v0, %s382_s9  ;;  %154 = vrot.lane.b32.xlu1 %v144_v1, %s382_s9  ;;  %vm172_vm3 = vcmask 228352  }
  0x34   : > { %s524_s20 = smov (!%p136_p9, %s261_s20), 7 }
  0x35   : > { %s268_s21 = sshll.u32 %s524_s20, 5 }
  0x36   : > { %s487_s24 = scalar_lea.vmem %s515_s1, %s268_s21 }
  0x37   : > { %178 = vst.msk [vmem:[%s487_s24] sm:$0x3f] %vm177_vm0, %v381_v2  ;;  %180 = vst.msk [vmem:[%s487_s24 + $0x16] sm:$0x3f] %vm177_vm0, %v381_v2  ;;  %152 = vrot.lane.b32.xlu0 %v143_v3, %s382_s9  ;;  %156 = vrot.lane.b32.xlu1 %v145_v4, %s382_s9 }
  0x38   : > { %179 = vst.msk [vmem:[%s487_s24 + $0x20] sm:$0x3f] %vm177_vm0, %v381_v2  ;;  %181 = vst.msk [vmem:[%s487_s24 + $0x36] sm:$0x3f] %vm177_vm0, %v381_v2 }
  0xa5   : > { %v151_v5 = vpop.permute.xlu0 %150  ;;  %v155_v6 = vpop.permute.xlu1 %154 }
  0xa6   : > { %v163_v7 = vsel %vm162_vm1, 0.0, %v151_v5  ;;  %v165_v8 = vsel %vm162_vm1, 0.0, %v155_v6 }
  0xa7   : > { %v168_v9 = vsel %vm167_vm2, %v163_v7, 0.0  ;;  %v170_v10 = vsel %vm167_vm2, %v165_v8, 0.0 }
  0xa8   : > { %173 = vst.msk [vmem:[%s487_s24 + $0x6] sm:$0xff] %vm172_vm3, %v168_v9  ;;  %175 = vst.msk [vmem:[%s487_s24 + $0x26] sm:$0xff] %vm172_vm3, %v170_v10 }
  0xa9   : > { %v153_v11 = vpop.permute.xlu0 %152  ;;  %v157_v12 = vpop.permute.xlu1 %156 }
  0xaa   : > { %v164_v13 = vsel %vm162_vm1, 0.0, %v153_v11  ;;  %v166_v14 = vsel %vm162_vm1, 0.0, %v157_v12 }
  0xab   : > { %v169_v15 = vsel %vm167_vm2, %v164_v13, 0.0  ;;  %v171_v16 = vsel %vm167_vm2, %v166_v14, 0.0 }
  0xac   : > { %174 = vst.msk [vmem:[%s487_s24 + $0xe] sm:$0xff] %vm172_vm3, %v169_v15  ;;  %176 = vst.msk [vmem:[%s487_s24 + $0x2e] sm:$0xff] %vm172_vm3, %v171_v16 }
  0xad PF: > { %p11_p7 = scmp.ge.s32.totalorder %s413_s11, 6   ;;  %s519_s6 = smov %s368_s7 }
  0xae   : > { %s520_s7 = smov %s372_s8  ;;  %s521_s8 = smov %s423_s14 }
  0xaf   : > { %s522_s9 = smov %s413_s11  ;;  %13 = sbr.rel (!%p11_p7) target bundleno = 3 (0x3), region = 64 }
  0xb6   :  { %206 = vsyncpa [#allocation3], 1 }
  0xb7   :  { %208 = vsyncpa [#allocation3 + $0x1], 1 }

</bundles_post_ra>
